<compile_context>
chip_gen: v6e
topology: v6e:2x2x1
jax: 0.10.0
libtpu: 0.0.40
codegen_flags: <defaults>
</compile_context>

<pallas_src>
import functools

import jax
import jax.numpy as jnp
import numpy as np
from jax.experimental import pallas as pl
from jax.experimental.pallas import tpu as pltpu


def _elu(v):
    # ELU with alpha=1.0 (PyTorch default): x if x > 0 else exp(x) - 1.
    # Clamp the exp argument so the (always-evaluated) negative branch never
    # overflows on the positive side. exp(x)-1 (instead of expm1) keeps a
    # guaranteed Mosaic lowering; the accuracy delta near 0 is ~1e-7 absolute.
    return jnp.where(v > 0, v, jnp.exp(jnp.minimum(v, 0.0)) - 1.0)


def _gating_kernel(x_ref, w0_ref, w1_ref, w2_ref, bias_ref, y_ref,
                   *, hidden_size, output_size):
    # x tile: (input_size, TB); weights resident in VMEM; biases packed (N, 1).
    cdt = w0_ref.dtype                       # MXU operand dtype (f32 or bf16)
    x = x_ref[...].astype(cdt)               # in-kernel cast (no-op if already cdt)

    b0 = bias_ref[0:hidden_size, :]
    b1 = bias_ref[hidden_size:2 * hidden_size, :]
    b2 = bias_ref[2 * hidden_size:2 * hidden_size + output_size, :]

    # Layer 0: H0 = ELU(w0 @ x + b0)   (f32 accumulation on the MXU)
    h0 = jnp.dot(w0_ref[...], x, preferred_element_type=jnp.float32) + b0
    h0 = _elu(h0)

    # Layer 1: H1 = ELU(w1 @ H0 + b1)
    h1 = jnp.dot(w1_ref[...], h0.astype(cdt),
                 preferred_element_type=jnp.float32) + b1
    h1 = _elu(h1)

    # Layer 2: H2 = w2 @ H1 + b2
    h2 = jnp.dot(w2_ref[...], h1.astype(cdt),
                 preferred_element_type=jnp.float32) + b2

    # Softmax over dim 0 (per column), numerically stable. output_size sits on
    # the sublane axis -> cheap reduce; exact divide so columns sum to 1.
    m = jnp.max(h2, axis=0, keepdims=True)
    e = jnp.exp(h2 - m)
    denom = jnp.sum(e, axis=0, keepdims=True)
    y_ref[...] = (e / denom).astype(y_ref.dtype)


def pack_gating_params(w0, b0, w1, b1, w2, b2, *, param_dtype=jnp.float32):
    """One-time parameter packing (hoisted out of the per-call path).

    Casts weights to the MXU operand dtype and coalesces the three tiny bias
    vectors into a single packed (2*hidden + output, 1) f32 buffer so the
    kernel needs one bias DMA instead of three.
    """
    bias = jnp.concatenate(
        [jnp.reshape(b0, (-1, 1)), jnp.reshape(b1, (-1, 1)),
         jnp.reshape(b2, (-1, 1))], axis=0).astype(jnp.float32)
    return {
        "w0": jnp.asarray(w0, param_dtype),
        "w1": jnp.asarray(w1, param_dtype),
        "w2": jnp.asarray(w2, param_dtype),
        "bias": bias,
    }


def _choose_batch_tile(batch, max_batch_tile):
    """Lane-dense (multiple of 128) batch tile, >= 2 grid steps when possible."""
    lane_batch = 128 * pl.cdiv(batch, 128)          # lane-padded batch width
    tile = 128 * pl.cdiv(min(max_batch_tile, lane_batch), 128)
    # v7x megacore: the "parallel" batch axis only helps if there are >= 2 grid
    # steps to shard across the two TensorCores.
    if tile >= lane_batch and lane_batch >= 256:
        tile = 128 * pl.cdiv(lane_batch // 2, 128)
    return tile


def gating_network_forward(params, x, *, max_batch_tile=2048, out_dtype=None):
    """Forward pass. x: (input_size, batch). Returns (output_size, batch)."""
    w0, w1, w2, bias = params["w0"], params["w1"], params["w2"], params["bias"]
    hidden_size, input_size = w0.shape
    output_size = w2.shape[0]
    in_dim, batch = x.shape
    assert in_dim == input_size, (in_dim, input_size)
    if out_dtype is None:
        out_dtype = x.dtype

    batch_tile = _choose_batch_tile(batch, max_batch_tile)
    num_tiles = pl.cdiv(batch, batch_tile)

    # Deeper input buffering only pays off with >= 3 grid steps.
    x_spec_kwargs = {}
    n_x_buf = 2
    if num_tiles >= 3:
        x_spec_kwargs["pipeline_mode"] = pl.Buffered(3)
        n_x_buf = 3

    # Explicit scoped-VMEM budget sized from the actual footprint (+ headroom),
    # so large batch tiles don't silently trip the 16/32 MiB defaults.
    f32b = 4
    est = (
        n_x_buf * input_size * batch_tile * x.dtype.itemsize          # x tiles
        + 2 * output_size * batch_tile * np.dtype(out_dtype).itemsize  # y tiles
        + 2 * (hidden_size * input_size + hidden_size * hidden_size
               + output_size * hidden_size) * w0.dtype.itemsize        # weights
        + 2 * bias.shape[0] * 128 * f32b                               # biases
        + (2 * hidden_size + 2 * output_size) * batch_tile * f32b      # f32 temps
    )
    vmem_limit = int(min(max(int(1.5 * est) + (2 << 20), 32 << 20), 56 << 20))

    kernel = functools.partial(
        _gating_kernel, hidden_size=hidden_size, output_size=output_size)

    y = pl.pallas_call(
        kernel,
        out_shape=jax.ShapeDtypeStruct((output_size, batch), out_dtype),
        grid=(num_tiles,),
        in_specs=[
            # x tiles stream along the batch (lane) axis; partial last block is
            # masked by Pallas and its columns are independent of valid ones.
            pl.BlockSpec((input_size, batch_tile), lambda i: (0, i),
                         **x_spec_kwargs),
            # Weights / packed bias: constant block index -> VMEM-resident.
            pl.BlockSpec((hidden_size, input_size), lambda i: (0, 0)),
            pl.BlockSpec((hidden_size, hidden_size), lambda i: (0, 0)),
            pl.BlockSpec((output_size, hidden_size), lambda i: (0, 0)),
            pl.BlockSpec((bias.shape[0], 1), lambda i: (0, 0)),
        ],
        out_specs=pl.BlockSpec((output_size, batch_tile), lambda i: (0, i)),
        compiler_params=pltpu.CompilerParams(
            dimension_semantics=("parallel",),
            vmem_limit_bytes=vmem_limit),
    )(x, w0, w1, w2, bias)

    return y


def init_gn_weight(key, out_dim, in_dim):
    """Uniform(-bound, bound) with bound = sqrt(6 / (out_dim + in_dim))."""
    bound = float(np.sqrt(6.0 / (out_dim + in_dim)))
    return jax.random.uniform(
        key, (out_dim, in_dim), dtype=jnp.float32, minval=-bound, maxval=bound)


if __name__ == "__main__":
    # Small shapes consistent with the module's forward.
    input_size, hidden_size, output_size = 64, 32, 8

    key = jax.random.PRNGKey(0)
    kx, k0, k1, k2 = jax.random.split(key, 4)

    # Deterministic parameter init (matches GatingNetwork.__init__ semantics).
    w0 = init_gn_weight(k0, hidden_size, input_size)
    w1 = init_gn_weight(k1, hidden_size, hidden_size)
    w2 = init_gn_weight(k2, output_size, hidden_size)
    b0 = jnp.zeros((hidden_size, 1), dtype=jnp.float32)
    b1 = jnp.zeros((hidden_size, 1), dtype=jnp.float32)
    b2 = jnp.zeros((output_size, 1), dtype=jnp.float32)

    # Static parameter prep hoisted out of the per-call path (done once).
    params = pack_gating_params(w0, b0, w1, b1, w2, b2)

    fwd = jax.jit(gating_network_forward, static_argnames=("max_batch_tile",))

    def reference(x):
        h0 = _elu(jnp.dot(w0, x, preferred_element_type=jnp.float32) + b0)
        h1 = _elu(jnp.dot(w1, h0, preferred_element_type=jnp.float32) + b1)
        h2 = jnp.dot(w2, h1, preferred_element_type=jnp.float32) + b2
        return jax.nn.softmax(h2, axis=0)

    # (batch, max_batch_tile):
    #   (4, 2048)   tiny module-consistent case, single masked tile
    #   (300, 128)  3 grid steps -> Buffered(3) input path + partial last block
    #   (1024,2048) tile chooser splits into 2x512 so both v7x cores get work
    for batch, max_tile in ((4, 2048), (300, 128), (1024, 2048)):
        x = jax.random.normal(jax.random.fold_in(kx, batch),
                              (input_size, batch), dtype=jnp.float32)
        y = jax.block_until_ready(fwd(params, x, max_batch_tile=max_tile))
        y_ref = np.asarray(reference(x))

        assert y.shape == (output_size, batch)
        np.testing.assert_allclose(np.asarray(y), y_ref, rtol=2e-2, atol=2e-3)
        np.testing.assert_allclose(np.asarray(y).sum(axis=0), np.ones(batch),
                                   rtol=1e-4, atol=1e-4)

    print("KERNEL_OK")
</pallas_src>

<mosaic_0001>
module attributes {stable_mosaic.version = 11 : i64} {
  func.func @_gating_kernel(%arg0: i32, %arg1: memref<64x128xf32, #tpu.memory_space<vmem>>, %arg2: memref<32x64xf32, #tpu.memory_space<vmem>>, %arg3: memref<32x32xf32, #tpu.memory_space<vmem>>, %arg4: memref<8x32xf32, #tpu.memory_space<vmem>>, %arg5: memref<72x1xf32, #tpu.memory_space<vmem>>, %arg6: memref<8x128xf32, #tpu.memory_space<vmem>>) attributes {dimension_semantics = [#tpu.dimension_semantics<parallel>], iteration_bounds = array<i64: 1>, scalar_prefetch = 0 : i64, scratch_operands = 0 : i64, tpu.core_type = #tpu.core_type<tc>, window_params = [{transform_indices = @transform_0, window_bounds = array<i64: 64, 128>}, {pipeline_mode = #tpu.pipeline_mode<synchronous>, transform_indices = @transform_1, window_bounds = array<i64: 32, 64>}, {pipeline_mode = #tpu.pipeline_mode<synchronous>, transform_indices = @transform_2, window_bounds = array<i64: 32, 32>}, {pipeline_mode = #tpu.pipeline_mode<synchronous>, transform_indices = @transform_3, window_bounds = array<i64: 8, 32>}, {pipeline_mode = #tpu.pipeline_mode<synchronous>, transform_indices = @transform_4, window_bounds = array<i64: 72, 1>}, {transform_indices = @transform_5, window_bounds = array<i64: 8, 128>}]} {
    %c0 = arith.constant 0 : index
    %c0_0 = arith.constant 0 : index
    %0 = vector.load %arg1[%c0, %c0_0] : memref<64x128xf32, #tpu.memory_space<vmem>>, vector<64x128xf32>
    %c0_1 = arith.constant 0 : index
    %c0_2 = arith.constant 0 : index
    %1 = vector.load %arg5[%c0_1, %c0_2] : memref<72x1xf32, #tpu.memory_space<vmem>>, vector<32x1xf32>
    %c32 = arith.constant 32 : index
    %c0_3 = arith.constant 0 : index
    %2 = vector.load %arg5[%c32, %c0_3] : memref<72x1xf32, #tpu.memory_space<vmem>>, vector<32x1xf32>
    %c64 = arith.constant 64 : index
    %c0_4 = arith.constant 0 : index
    %3 = vector.load %arg5[%c64, %c0_4] : memref<72x1xf32, #tpu.memory_space<vmem>>, vector<8x1xf32>
    %c0_5 = arith.constant 0 : index
    %c0_6 = arith.constant 0 : index
    %4 = vector.load %arg2[%c0_5, %c0_6] : memref<32x64xf32, #tpu.memory_space<vmem>>, vector<32x64xf32>
    %cst = arith.constant dense<0.000000e+00> : vector<32x128xf32>
    %5 = tpu.matmul %4, %0, %cst {dimension_numbers = #tpu.dot_dimension_numbers<[1], [0], [0], [1], [0, 0, 1, 1], [], []>} : vector<32x64xf32>, vector<64x128xf32>, vector<32x128xf32> -> vector<32x128xf32>
    %6 = vector.broadcast %1 : vector<32x1xf32> to vector<32x128xf32>
    %7 = arith.addf %5, %6 : vector<32x128xf32>
    %cst_7 = arith.constant 0.000000e+00 : f32
    %8 = vector.broadcast %cst_7 : f32 to vector<32x128xf32>
    %9 = arith.cmpf ogt, %7, %8 : vector<32x128xf32>
    %cst_8 = arith.constant 0.000000e+00 : f32
    %10 = vector.broadcast %cst_8 : f32 to vector<32x128xf32>
    %11 = arith.minimumf %7, %10 : vector<32x128xf32>
    %12 = math.exp %11 : vector<32x128xf32>
    %cst_9 = arith.constant 1.000000e+00 : f32
    %13 = vector.broadcast %cst_9 : f32 to vector<32x128xf32>
    %14 = arith.subf %12, %13 : vector<32x128xf32>
    %15 = arith.select %9, %7, %14 : vector<32x128xi1>, vector<32x128xf32>
    %c0_10 = arith.constant 0 : index
    %c0_11 = arith.constant 0 : index
    %16 = vector.load %arg3[%c0_10, %c0_11] : memref<32x32xf32, #tpu.memory_space<vmem>>, vector<32x32xf32>
    %cst_12 = arith.constant dense<0.000000e+00> : vector<32x128xf32>
    %17 = tpu.matmul %16, %15, %cst_12 {dimension_numbers = #tpu.dot_dimension_numbers<[1], [0], [0], [1], [0, 0, 1, 1], [], []>} : vector<32x32xf32>, vector<32x128xf32>, vector<32x128xf32> -> vector<32x128xf32>
    %18 = vector.broadcast %2 : vector<32x1xf32> to vector<32x128xf32>
    %19 = arith.addf %17, %18 : vector<32x128xf32>
    %cst_13 = arith.constant 0.000000e+00 : f32
    %20 = vector.broadcast %cst_13 : f32 to vector<32x128xf32>
    %21 = arith.cmpf ogt, %19, %20 : vector<32x128xf32>
    %cst_14 = arith.constant 0.000000e+00 : f32
    %22 = vector.broadcast %cst_14 : f32 to vector<32x128xf32>
    %23 = arith.minimumf %19, %22 : vector<32x128xf32>
    %24 = math.exp %23 : vector<32x128xf32>
    %cst_15 = arith.constant 1.000000e+00 : f32
    %25 = vector.broadcast %cst_15 : f32 to vector<32x128xf32>
    %26 = arith.subf %24, %25 : vector<32x128xf32>
    %27 = arith.select %21, %19, %26 : vector<32x128xi1>, vector<32x128xf32>
    %c0_16 = arith.constant 0 : index
    %c0_17 = arith.constant 0 : index
    %28 = vector.load %arg4[%c0_16, %c0_17] : memref<8x32xf32, #tpu.memory_space<vmem>>, vector<8x32xf32>
    %cst_18 = arith.constant dense<0.000000e+00> : vector<8x128xf32>
    %29 = tpu.matmul %28, %27, %cst_18 {dimension_numbers = #tpu.dot_dimension_numbers<[1], [0], [0], [1], [0, 0, 1, 1], [], []>} : vector<8x32xf32>, vector<32x128xf32>, vector<8x128xf32> -> vector<8x128xf32>
    %30 = vector.broadcast %3 : vector<8x1xf32> to vector<8x128xf32>
    %31 = arith.addf %29, %30 : vector<8x128xf32>
    %cst_19 = arith.constant dense<0xFF800000> : vector<128xf32>
    %32 = vector.multi_reduction <maximumf>, %31, %cst_19 [0] : vector<8x128xf32> to vector<128xf32>
    %33 = vector.shape_cast %32 : vector<128xf32> to vector<1x128xf32>
    %34 = vector.broadcast %33 : vector<1x128xf32> to vector<8x128xf32>
    %35 = arith.subf %31, %34 : vector<8x128xf32>
    %36 = math.exp %35 : vector<8x128xf32>
    %cst_20 = arith.constant dense<0.000000e+00> : vector<128xf32>
    %37 = vector.multi_reduction <add>, %36, %cst_20 [0] : vector<8x128xf32> to vector<128xf32>
    %38 = vector.shape_cast %37 : vector<128xf32> to vector<1x128xf32>
    %39 = vector.broadcast %38 : vector<1x128xf32> to vector<8x128xf32>
    %40 = arith.divf %36, %39 : vector<8x128xf32>
    %c0_21 = arith.constant 0 : index
    %c0_22 = arith.constant 0 : index
    %41 = vector.load %arg6[%c0_21, %c0_22] : memref<8x128xf32, #tpu.memory_space<vmem>>, vector<8x128xf32>
    tpu.vector_store %arg6[%c0_21, %c0_22], %40 {strides = array<i32>} : memref<8x128xf32, #tpu.memory_space<vmem>>, vector<8x128xf32>,
    return
  }
  func.func @transform_0(%arg0: i32) -> (i32, i32) {
    %c0_i32 = arith.constant 0 : i32
    %c0_i32_0 = arith.constant 0 : i32
    return %c0_i32, %arg0 : i32, i32
  }
  func.func @transform_1(%arg0: i32) -> (i32, i32) {
    %c0_i32 = arith.constant 0 : i32
    %c0_i32_0 = arith.constant 0 : i32
    %c0_i32_1 = arith.constant 0 : i32
    return %c0_i32, %c0_i32_0 : i32, i32
  }
  func.func @transform_2(%arg0: i32) -> (i32, i32) {
    %c0_i32 = arith.constant 0 : i32
    %c0_i32_0 = arith.constant 0 : i32
    %c0_i32_1 = arith.constant 0 : i32
    return %c0_i32, %c0_i32_0 : i32, i32
  }
  func.func @transform_3(%arg0: i32) -> (i32, i32) {
    %c0_i32 = arith.constant 0 : i32
    %c0_i32_0 = arith.constant 0 : i32
    %c0_i32_1 = arith.constant 0 : i32
    return %c0_i32, %c0_i32_0 : i32, i32
  }
  func.func @transform_4(%arg0: i32) -> (i32, i32) {
    %c0_i32 = arith.constant 0 : i32
    %c0_i32_0 = arith.constant 0 : i32
    %c0_i32_1 = arith.constant 0 : i32
    return %c0_i32, %c0_i32_0 : i32, i32
  }
  func.func @transform_5(%arg0: i32) -> (i32, i32) {
    %c0_i32 = arith.constant 0 : i32
    %c0_i32_0 = arith.constant 0 : i32
    return %c0_i32, %arg0 : i32, i32
  }
}

</mosaic_0001>

<bundles_post_ra>
// kernel: gating_network_forward.1
= control target key start
LH: loop header
LB: loop body
LE: loop exit
PB: predicated region body
PF: predicated region fallthrough
CT: control target
= control target key end

     0   :  { %vm61_vm0 = vcmask 523264   ;;  %v544_v2 = vmov 0   ;;  %vm207_vm1 = vcmask 261120   ;;  %v545_v58 = vmov 0.0   ;;  %s667_s0 = inlined_call_operand.vmem [shape: f32[64,4], index: 0, kind: input, shape index: {}]   ;;  %s668_s1 = inlined_call_operand.vmem [shape: f32[32,64], index: 1, kind: input, shape index: {}]   ;;  %s669_s4 = inlined_call_operand.vmem [shape: f32[72,1], index: 4, kind: input, shape index: {}]   ;;  %s670_s2 = inlined_call_operand.vmem [shape: f32[32,32], index: 2, kind: input, shape index: {}]   ;;  %s671_s3 = inlined_call_operand.vmem [shape: f32[8,32], index: 3, kind: input, shape index: {}]   ;;  %s672_s5 = inlined_call_operand.vmem [shape: f32[8,4], index: 5, kind: output, shape index: {}]  }
   0x1   :  { %v27_v0 = vld [vmem:[%s667_s0 + $0x38] sm:$0xff]  ;;  %v26_v1 = vld [vmem:[%s667_s0 + $0x30] sm:$0xff]  ;;  %522 = vset.pattern.permute.xlu0 %v544_v2  ;;  %523 = vset.pattern.permute.xlu1 %v544_v2  ;;  %v25_v3 = vld [vmem:[%s667_s0 + $0x28] sm:$0xff]  ;;  %vm546_vm6 = vmmov 0  }
   0x2   :  { %472 = vmatprep.subr.mxu0 %v27_v0  ;;  %v37_v4 = vld [vmem:[%s668_s1] sm:$0xff]  ;;  %v31_v6 = vld [vmem:[%s669_s4 + $0x18] sm:$0xff]  ;;  %v29_v7 = vld [vmem:[%s669_s4 + $0x8] sm:$0xff] }
   0x3   :  { %473 = vmatpush3.msra.mxu0 %v27_v0  ;;  %488 = vmatprep.mubr.msk.f32.mxu0 %vm61_vm0, %v37_v4  ;;  %v24_v5 = vld [vmem:[%s667_s0 + $0x20] sm:$0xff]  ;;  %v23_v8 = vld [vmem:[%s667_s0 + $0x18] sm:$0xff]  ;;  %v30_v9 = vld [vmem:[%s669_s4 + $0x10] sm:$0xff] }
   0x4   :  { %474 = vmatprep.subr.mxu0 %v26_v1  ;;  %58 = vperm.xlu0 %522, %v31_v6   ;;  %v28_v10 = vld [vmem:[%s669_s4] sm:$0xff]  ;;  %v22_v11 = vld [vmem:[%s667_s0 + $0x10] sm:$0xff]  ;;  %v21_v12 = vld [vmem:[%s667_s0 + $0x8] sm:$0xff] }
   0x5   :  { %475 = vmatpush3.msra.mxu0 %v26_v1  ;;  %48 = vperm.xlu1 %523, %v29_v7   ;;  %v35_v13 = vld [vmem:[%s669_s4 + $0x38] sm:$0xff]  ;;  %v34_v14 = vld [vmem:[%s669_s4 + $0x30] sm:$0xff]  ;;  %v20_v15 = vld [vmem:[%s667_s0] sm:$0xff] }
   0x6   :  { %476 = vmatprep.subr.mxu0 %v25_v3  ;;  %v38_v16 = vld [vmem:[%s668_s1 + $0x8] sm:$0xff]  ;;  %v39_v18 = vld [vmem:[%s668_s1 + $0x10] sm:$0xff]  ;;  %v32_v19 = vld [vmem:[%s669_s4 + $0x20] sm:$0xff] }
   0x7   :  { %477 = vmatpush3.msra.mxu0 %v25_v3  ;;  %v33_v17 = vld [vmem:[%s669_s4 + $0x28] sm:$0xff]  ;;  %v40_v20 = vld [vmem:[%s668_s1 + $0x18] sm:$0xff]  ;;  %v36_v21 = vld [vmem:[%s669_s4 + $0x40] sm:$0xff] }
   0x8   :  { %478 = vmatprep.subr.mxu0 %v24_v5  ;;  %53 = vperm.xlu0 %522, %v30_v9   ;;  %v183_v22 = vld [vmem:[%s670_s2] sm:$0xff]  ;;  %v184_v55 = vld [vmem:[%s670_s2 + $0x8] sm:$0xff]  ;;  %v185_v56 = vld [vmem:[%s670_s2 + $0x10] sm:$0xff] }
   0x9   :  { %479 = vmatpush3.msra.mxu0 %v24_v5  ;;  %43 = vperm.xlu1 %523, %v28_v10   ;;  %v186_v57 = vld [vmem:[%s670_s2 + $0x18] sm:$0xff] }
   0xa   :  { %480 = vmatprep.subr.mxu0 %v23_v8  ;;  %502 = vmatprep.mubr.msk.f32.mxu1 %vm207_vm1, %v183_v22 }
   0xb   :  { %481 = vmatpush3.msra.mxu0 %v23_v8 }
   0xc   :  { %482 = vmatprep.subr.mxu0 %v22_v11  ;;  %204 = vperm.xlu0 %522, %v35_v13  }
   0xd   :  { %483 = vmatpush3.msra.mxu0 %v22_v11  ;;  %199 = vperm.xlu1 %523, %v34_v14  }
   0xe   :  { %484 = vmatprep.subr.mxu0 %v21_v12 }
   0xf   :  { %485 = vmatpush3.msra.mxu0 %v21_v12 }
  0x10   :  { %486 = vmatprep.subr.mxu0 %v20_v15  ;;  %194 = vperm.xlu0 %522, %v33_v17  }
  0x11   :  { %487 = vmatpush3.msra.mxu0 %v20_v15  ;;  %189 = vperm.xlu1 %523, %v32_v19  }
  0x12   :  { %489 = vmatmul.mubr.msk.f32.vlgmr.msra.gmra.mxu0 %vm61_vm0, %v38_v16 }
  0x13   :  { %491 = vmatprep.mubr.msk.f32.mxu0 %vm61_vm0, %v39_v18 }
  0x14   :  { %332 = vperm.xlu0 %522, %v36_v21  }
  0x16   :  { %492 = vmatmul.mubr.msk.f32.gmra.mxu0 %vm61_vm0, %v40_v20 }
  0x7f   :  { %v59_v24 = vpop.permute.xlu0 %58 }
  0x80   :  { %v49_v23 = vpop.permute.xlu1 %48 }
  0x83   :  { %v54_v34 = vpop.permute.xlu0 %53 }
  0x84   :  { %v44_v27 = vpop.permute.xlu1 %43 }
  0x87   :  { %v205_v59 = vpop.permute.xlu0 %204 }
  0x88   :  { %v200_v60 = vpop.permute.xlu1 %199 }
  0x8b   :  { %v195_v61 = vpop.permute.xlu0 %194 }
  0x8c   :  { %v190_v0 = vpop.permute.xlu1 %189 }
  0xd2   :  { %v490_v25 = vpop.f32.mrf.mxu0 }
  0xd3   :  { %v146_v26 = vadd.f32 %v490_v25, %v49_v23 }
  0xd4   :  { %v140_v28 = vpop.f32.mrf.mxu0 }
  0xd5   :  { %v164_v29 = vmin.f32 %v146_v26, 0.0  ;;  %v141_v30 = vadd.f32 %v140_v28, %v44_v27  ;;  %vm160_vm4 = vcmp.gt.f32.partialorder %v146_v26, 0.0  ;;  %v333_v28 = vpop.permute.xlu0 %332 }
  0xd6   :  { %v493_v31 = vpop.f32.mrf.mxu0 }
  0xd7   :  { %v163_v32 = vmin.f32 %v141_v30, 0.0  ;;  %v156_v33 = vadd.f32 %v493_v31, %v59_v24  ;;  %v169_v35 = vmul.f32 1.442695, %v164_v29  ;;  %vm159_vm5 = vcmp.gt.f32.partialorder %v141_v30, 0.0 }
  0xd8   :  { %v150_v36 = vpop.f32.mrf.mxu0 }
  0xd9   :  { %v166_v37 = vmin.f32 %v156_v33, 0.0  ;;  %v151_v38 = vadd.f32 %v150_v36, %v54_v34  ;;  %v167_v39 = vmul.f32 1.442695, %v163_v32  ;;  %524 = vpow2.f32 %v169_v35 }
  0xda   :  { %vm162_vm2 = vcmp.gt.f32.partialorder %v156_v33, 0.0 }
  0xdb   :  { %v173_v40 = vmul.f32 1.442695, %v166_v37  ;;  %v165_v41 = vmin.f32 %v151_v38, 0.0  ;;  %vm161_vm3 = vcmp.gt.f32.partialorder %v151_v38, 0.0 }
  0xdd   :  { %526 = vpow2.f32 %v173_v40  ;;  %v171_v42 = vmul.f32 1.442695, %v165_v41 }
  0xde   :  { %528 = vpow2.f32 %v167_v39 }
  0xdf   :  { %530 = vpow2.f32 %v171_v42 }
  0xe6   :  { %v525_v43 = vpop.eup %524 }
  0xe7   :  { %v435_v50 = vadd.f32 -1.0, %v525_v43 }
  0xe9   :  { %v180_v53 = vsel %vm160_vm4, %v146_v26, %v435_v50  ;;  %v329_v26 = vld [vmem:[%s671_s3] sm:$0xff] }
  0xea   :  { %v527_v44 = vpop.eup %526 }
  0xeb   :  { %v529_v45 = vpop.eup %528  ;;  %v437_v46 = vadd.f32 -1.0, %v527_v44 }
  0xec   :  { %v531_v47 = vpop.eup %530  ;;  %v434_v52 = vadd.f32 -1.0, %v529_v45 }
  0xed   :  { %v182_v48 = vsel %vm162_vm2, %v156_v33, %v437_v46  ;;  %v436_v49 = vadd.f32 -1.0, %v531_v47 }
  0xee   :  { %494 = vmatprep.subr.mxu1 %v182_v48  ;;  %v179_v54 = vsel %vm159_vm5, %v141_v30, %v434_v52 }
  0xef   :  { %495 = vmatpush3.msra.mxu1 %v182_v48  ;;  %v181_v51 = vsel %vm161_vm3, %v151_v38, %v436_v49 }
  0xf0   :  { %496 = vmatprep.subr.mxu1 %v181_v51 }
  0xf1   :  { %497 = vmatpush3.msra.mxu1 %v181_v51 }
  0xf2   :  { %498 = vmatprep.subr.mxu1 %v180_v53 }
  0xf3   :  { %499 = vmatpush3.msra.mxu1 %v180_v53 }
  0xf4   :  { %500 = vmatprep.subr.mxu1 %v179_v54 }
  0xf5   :  { %501 = vmatpush3.msra.mxu1 %v179_v54 }
  0xf6   :  { %503 = vmatmul.mubr.msk.f32.vlgmr.msra.gmra.mxu1 %vm207_vm1, %v184_v55  ;;  %508 = vmatprep.subr.mxu1 %v545_v58 }
  0xf7   :  { %505 = vmatprep.mubr.msk.f32.mxu1 %vm207_vm1, %v185_v56 }
  0xfa   :  { %506 = vmatmul.mubr.msk.f32.gmra.mxu1 %vm207_vm1, %v186_v57 }
  0xfb   :  { %516 = vmatprep.mubr.msk.f32.mxu1 %vm546_vm6, %v545_v58 }
 0x1b6   :  { %v504_v62 = vpop.f32.mrf.mxu1 }
 0x1b7   :  { %v292_v63 = vadd.f32 %v504_v62, %v195_v61 }
 0x1b8   :  { %v286_v1 = vpop.f32.mrf.mxu1 }
 0x1b9   :  { %v287_v2 = vadd.f32 %v286_v1, %v190_v0  ;;  %v310_v3 = vmin.f32 %v292_v63, 0.0  ;;  %vm306_vm9 = vcmp.gt.f32.partialorder %v292_v63, 0.0 }
 0x1ba   :  { %v507_v4 = vpop.f32.mrf.mxu1 }
 0x1bb   :  { %v309_v5 = vmin.f32 %v287_v2, 0.0  ;;  %v302_v6 = vadd.f32 %v507_v4, %v205_v59  ;;  %v315_v9 = vmul.f32 1.442695, %v310_v3  ;;  %vm305_vm10 = vcmp.gt.f32.partialorder %v287_v2, 0.0 }
 0x1bc   :  { %v296_v7 = vpop.f32.mrf.mxu1 }
 0x1bd   :  { %v312_v8 = vmin.f32 %v302_v6, 0.0  ;;  %v297_v10 = vadd.f32 %v296_v7, %v200_v60  ;;  %v313_v11 = vmul.f32 1.442695, %v309_v5  ;;  %vm308_vm7 = vcmp.gt.f32.partialorder %v302_v6, 0.0 }
 0x1bf   :  { %v319_v12 = vmul.f32 1.442695, %v312_v8  ;;  %v311_v13 = vmin.f32 %v297_v10, 0.0  ;;  %vm307_vm8 = vcmp.gt.f32.partialorder %v297_v10, 0.0 }
 0x1c1   :  { %532 = vpow2.f32 %v319_v12  ;;  %v317_v14 = vmul.f32 1.442695, %v311_v13 }
 0x1c2   :  { %534 = vpow2.f32 %v315_v9 }
 0x1c3   :  { %536 = vpow2.f32 %v313_v11 }
 0x1c4   :  { %538 = vpow2.f32 %v317_v14 }
 0x1ce   :  { %v533_v15 = vpop.eup %532 }
 0x1cf   :  { %v535_v16 = vpop.eup %534  ;;  %v445_v17 = vadd.f32 -1.0, %v533_v15 }
 0x1d0   :  { %v537_v18 = vpop.eup %536  ;;  %v443_v22 = vadd.f32 -1.0, %v535_v16 }
 0x1d1   :  { %v539_v19 = vpop.eup %538  ;;  %v328_v20 = vsel %vm308_vm7, %v302_v6, %v445_v17  ;;  %v442_v24 = vadd.f32 -1.0, %v537_v18 }
 0x1d2   :  { %509 = vmatpush3.msra.mxu1 %v328_v20  ;;  %v444_v21 = vadd.f32 -1.0, %v539_v19  ;;  %v326_v25 = vsel %vm306_vm9, %v292_v63, %v443_v22 }
 0x1d3   :  { %510 = vmatprep.subr.mxu1 %v545_v58  ;;  %v325_v27 = vsel %vm305_vm10, %v287_v2, %v442_v24 }
 0x1d4   :  { %v327_v23 = vsel %vm307_vm8, %v297_v10, %v444_v21 }
 0x1d5   :  { %511 = vmatpush3.msra.mxu1 %v327_v23 }
 0x1d6   :  { %512 = vmatprep.subr.mxu1 %v545_v58 }
 0x1d7   :  { %513 = vmatpush3.msra.mxu1 %v326_v25 }
 0x1d8   :  { %514 = vmatprep.subr.mxu1 %v545_v58 }
 0x1d9   :  { %515 = vmatpush3.msra.mxu1 %v325_v27 }
 0x1da   :  { %517 = vmatmul.mubr.msk.f32.vlgmr.msra.gmra.mxu1 %vm207_vm1, %v329_v26 }
 0x29a   :  { %v404_v29 = vpop.f32.mrf.mxu1 }
 0x29b   :  { %v405_v30 = vadd.f32 %v404_v29, %v333_v28 }
 0x29c   :  { %v518_v31 = vpop.f32.mrf.mxu1 }
 0x29d   :  { %v408_v32 = vrot.slane %v405_v30, 4 }
 0x29f   :  { %v409_v33 = vmax.f32 %v405_v30, %v408_v32 }
 0x2a1   :  { %v410_v34 = vrot.slane %v409_v33, 2 }
 0x2a3   :  { %v411_v35 = vmax.f32 %v409_v33, %v410_v34 }
 0x2a5   :  { %v412_v36 = vrot.slane %v411_v35, 1 }
 0x2a7   :  { %v413_v37 = vmax.f32 %v411_v35, %v412_v36 }
 0x2a9   :  { %v414_v38 = vsub.f32 %v405_v30, %v413_v37 }
 0x2ab   :  { %v415_v39 = vmul.f32 1.442695, %v414_v38 }
 0x2ad   :  { %540 = vpow2.f32 %v415_v39 }
 0x2ba   :  { %v541_v40 = vpop.eup %540 }
 0x2bb   :  { %v417_v41 = vrot.slane %v541_v40, 4 }
 0x2bd   :  { %v418_v42 = vadd.f32 %v541_v40, %v417_v41 }
 0x2bf   :  { %v419_v43 = vrot.slane %v418_v42, 2 }
 0x2c1   :  { %v420_v44 = vadd.f32 %v419_v43, %v418_v42 }
 0x2c3   :  { %v421_v45 = vrot.slane %v420_v44, 1 }
 0x2c5   :  { %v422_v46 = vadd.f32 %v421_v45, %v420_v44 }
 0x2c7   :  { %542 = vrcp.f32 %v422_v46 }
 0x2d4   :  { %v543_v47 = vpop.eup %542 }
 0x2d5   :  { %v424_v48 = vmul.f32 %v543_v47, %v541_v40 }
 0x2d7   :  { %425 = vst [vmem:[%s672_s5] sm:$0xff] %v424_v48 }

</bundles_post_ra>
